<compile_context>
chip_gen: v5e
topology: v5e:2x2
jax: 0.10.0
libtpu: 0.0.40
codegen_flags: <defaults>
</compile_context>

<pallas_src>
import jax
import jax.numpy as jnp
from jax.experimental import pallas as pl
from jax.experimental.pallas import tpu as pltpu

# real model dims (from the PyTorch module)
D_IN = 3
D_HID = 10
D_OUT = 1

# batch tile for the pipelined (large-batch) path.
# x tile = TB*3*4 B = 48 KiB, out tile = 16 KiB -> double-buffered footprint
# is well under the scoped-VMEM default on every TPU generation.
TB = 4096


def _round_up(x, m):
    return (x + m - 1) // m * m


def _mlp_kernel(x_ref, w1_ref, b1_ref, w2t_ref, b2_ref, o_ref):
    """y = relu(x @ W1 + b1) @ W2 + b2, done entirely on the VPU/XLU."""
    x = x_ref[...]                       # (TB, 3) f32
    w1 = w1_ref[...]                     # (3, 10)
    # Layer 1: K=3 broadcast FMAs (no MXU, no lane padding of x needed).
    h = b1_ref[...]                      # (1, 10) -> broadcasts over batch
    for k in range(D_IN):                # unrolled at trace time
        h = h + x[:, k:k + 1] * w1[k:k + 1, :]
    h = jnp.maximum(h, 0.0)              # ReLU               (TB, 10)
    # Layer 2: elementwise mul by w2^T + lane reduction (XLU), f32 accumulate.
    o = jnp.sum(h * w2t_ref[...], axis=-1, keepdims=True) + b2_ref[...]
    o_ref[...] = o.astype(o_ref.dtype)   # (TB, 1)


def pack_params(w1, b1, w2, b2):
    """One-time layout prep (hoisted out of the forward pass)."""
    w1p = jnp.asarray(w1, jnp.float32).reshape(D_IN, D_HID)        # (3, 10)
    b1p = jnp.asarray(b1, jnp.float32).reshape(1, D_HID)           # (1, 10)
    w2t = jnp.asarray(w2, jnp.float32).reshape(D_HID, D_OUT).T     # (1, 10)
    b2p = jnp.asarray(b2, jnp.float32).reshape(1, D_OUT)           # (1, 1)
    return w1p, b1p, w2t, b2p


def simple_nn_forward(x, params):
    """x: (B, 3) f32; params from pack_params. Returns logits (B, 1) f32."""
    w1p, b1p, w2t, b2p = params
    x = jnp.asarray(x, jnp.float32)
    B = x.shape[0]

    full_spec = lambda shape: pl.BlockSpec(shape, lambda: (0,) * len(shape))

    if B <= TB:
        # Small-batch fast path: single block, no grid machinery, no padding.
        return pl.pallas_call(
            _mlp_kernel,
            out_shape=jax.ShapeDtypeStruct((B, D_OUT), jnp.float32),
            grid=(),
            in_specs=[
                full_spec((B, D_IN)),
                full_spec((D_IN, D_HID)),
                full_spec((1, D_HID)),
                full_spec((1, D_HID)),
                full_spec((1, D_OUT)),
            ],
            out_specs=full_spec((B, D_OUT)),
        )(x, w1p, b1p, w2t, b2p)

    # Large-batch path: batch-tiled grid -> double-buffered HBM<->VMEM pipeline.
    B_pad = _round_up(B, TB)
    xp = x if B_pad == B else jnp.zeros((B_pad, D_IN), jnp.float32).at[:B].set(x)
    resident = lambda shape: pl.BlockSpec(shape, lambda i: (0,) * len(shape))

    out = pl.pallas_call(
        _mlp_kernel,
        out_shape=jax.ShapeDtypeStruct((B_pad, D_OUT), jnp.float32),
        grid=(B_pad // TB,),
        in_specs=[
            pl.BlockSpec((TB, D_IN), lambda i: (i, 0)),   # x tiles stream
            resident((D_IN, D_HID)),                      # weights stay resident
            resident((1, D_HID)),
            resident((1, D_HID)),
            resident((1, D_OUT)),
        ],
        out_specs=pl.BlockSpec((TB, D_OUT), lambda i: (i, 0)),
        compiler_params=pltpu.CompilerParams(
            dimension_semantics=("parallel",)),           # v7x: shard over 2 TCs
    )(xp, w1p, b1p, w2t, b2p)
    return out[:B] if B_pad != B else out


def init_params(key):
    """Deterministic init mimicking nn.Linear's U(-1/sqrt(fan_in), 1/sqrt(fan_in))."""
    k1, k2, k3, k4 = jax.random.split(key, 4)
    bound1 = 1.0 / jnp.sqrt(jnp.float32(D_IN))
    bound2 = 1.0 / jnp.sqrt(jnp.float32(D_HID))
    w1 = jax.random.uniform(k1, (D_IN, D_HID), jnp.float32, -bound1, bound1)
    b1 = jax.random.uniform(k2, (D_HID,), jnp.float32, -bound1, bound1)
    w2 = jax.random.uniform(k3, (D_HID, D_OUT), jnp.float32, -bound2, bound2)
    b2 = jax.random.uniform(k4, (D_OUT,), jnp.float32, -bound2, bound2)
    return w1, b1, w2, b2


# TODO(synk): training (train_step/train_model with Adam + BCEWithLogitsLoss) is not
# implemented as a kernel; only the forward pass (and predict's thresholding) is.

if __name__ == "__main__":
    key = jax.random.PRNGKey(0)
    kx, kx2, kp = jax.random.split(key, 3)

    w1, b1, w2, b2 = init_params(kp)
    params = pack_params(w1, b1, w2, b2)

    # Small-batch fast path (matches the module's (batch, 3) spec).
    batch = 8
    x = jax.random.normal(kx, (batch, D_IN), jnp.float32)
    logits = simple_nn_forward(x, params)
    jax.block_until_ready(logits)

    ref = jnp.maximum(x @ w1 + b1, 0.0) @ w2 + b2
    assert logits.shape == (batch, D_OUT)
    assert jnp.allclose(logits, ref, atol=1e-5, rtol=1e-5)

    # predict() semantics: (logits > 0) as int
    preds = (logits > 0.0).astype(jnp.int32)
    jax.block_until_ready(preds)

    # Also exercise the tiled (large-batch) path, including the non-divisible pad.
    batch2 = TB + 8
    x2 = jax.random.normal(kx2, (batch2, D_IN), jnp.float32)
    logits2 = simple_nn_forward(x2, params)
    jax.block_until_ready(logits2)
    ref2 = jnp.maximum(x2 @ w1 + b1, 0.0) @ w2 + b2
    assert logits2.shape == (batch2, D_OUT)
    assert jnp.allclose(logits2, ref2, atol=1e-5, rtol=1e-5)

    print("KERNEL_OK")
</pallas_src>

<mosaic_0001>
module attributes {stable_mosaic.version = 11 : i64} {
  func.func @_mlp_kernel(%arg0: memref<8x3xf32, #tpu.memory_space<vmem>>, %arg1: memref<3x10xf32, #tpu.memory_space<vmem>>, %arg2: memref<1x10xf32, #tpu.memory_space<vmem>>, %arg3: memref<1x10xf32, #tpu.memory_space<vmem>>, %arg4: memref<1x1xf32, #tpu.memory_space<vmem>>, %arg5: memref<8x1xf32, #tpu.memory_space<vmem>>) attributes {dimension_semantics = [], scalar_prefetch = 0 : i64, scratch_operands = 0 : i64, tpu.core_type = #tpu.core_type<tc>} {
    %c0 = arith.constant 0 : index
    %c0_0 = arith.constant 0 : index
    %0 = vector.load %arg0[%c0, %c0_0] : memref<8x3xf32, #tpu.memory_space<vmem>>, vector<8x3xf32>
    %c0_1 = arith.constant 0 : index
    %c0_2 = arith.constant 0 : index
    %1 = vector.load %arg1[%c0_1, %c0_2] : memref<3x10xf32, #tpu.memory_space<vmem>>, vector<3x10xf32>
    %c0_3 = arith.constant 0 : index
    %c0_4 = arith.constant 0 : index
    %2 = vector.load %arg2[%c0_3, %c0_4] : memref<1x10xf32, #tpu.memory_space<vmem>>, vector<1x10xf32>
    %3 = vector.extract_strided_slice %0 {offsets = [0, 0], sizes = [8, 1], strides = [1, 1]} : vector<8x3xf32> to vector<8x1xf32>
    %4 = vector.extract_strided_slice %1 {offsets = [0, 0], sizes = [1, 10], strides = [1, 1]} : vector<3x10xf32> to vector<1x10xf32>
    %5 = vector.broadcast %3 : vector<8x1xf32> to vector<8x10xf32>
    %6 = vector.broadcast %4 : vector<1x10xf32> to vector<8x10xf32>
    %7 = arith.mulf %5, %6 : vector<8x10xf32>
    %8 = vector.broadcast %2 : vector<1x10xf32> to vector<8x10xf32>
    %9 = arith.addf %8, %7 : vector<8x10xf32>
    %10 = vector.extract_strided_slice %0 {offsets = [0, 1], sizes = [8, 1], strides = [1, 1]} : vector<8x3xf32> to vector<8x1xf32>
    %11 = vector.extract_strided_slice %1 {offsets = [1, 0], sizes = [1, 10], strides = [1, 1]} : vector<3x10xf32> to vector<1x10xf32>
    %12 = vector.broadcast %10 : vector<8x1xf32> to vector<8x10xf32>
    %13 = vector.broadcast %11 : vector<1x10xf32> to vector<8x10xf32>
    %14 = arith.mulf %12, %13 : vector<8x10xf32>
    %15 = arith.addf %9, %14 : vector<8x10xf32>
    %16 = vector.extract_strided_slice %0 {offsets = [0, 2], sizes = [8, 1], strides = [1, 1]} : vector<8x3xf32> to vector<8x1xf32>
    %17 = vector.extract_strided_slice %1 {offsets = [2, 0], sizes = [1, 10], strides = [1, 1]} : vector<3x10xf32> to vector<1x10xf32>
    %18 = vector.broadcast %16 : vector<8x1xf32> to vector<8x10xf32>
    %19 = vector.broadcast %17 : vector<1x10xf32> to vector<8x10xf32>
    %20 = arith.mulf %18, %19 : vector<8x10xf32>
    %21 = arith.addf %15, %20 : vector<8x10xf32>
    %cst = arith.constant 0.000000e+00 : f32
    %22 = vector.broadcast %cst : f32 to vector<8x10xf32>
    %23 = arith.maximumf %21, %22 : vector<8x10xf32>
    %c0_5 = arith.constant 0 : index
    %c0_6 = arith.constant 0 : index
    %24 = vector.load %arg3[%c0_5, %c0_6] : memref<1x10xf32, #tpu.memory_space<vmem>>, vector<1x10xf32>
    %25 = vector.broadcast %24 : vector<1x10xf32> to vector<8x10xf32>
    %26 = arith.mulf %23, %25 : vector<8x10xf32>
    %cst_7 = arith.constant dense<0.000000e+00> : vector<8xf32>
    %27 = vector.multi_reduction <add>, %26, %cst_7 [1] : vector<8x10xf32> to vector<8xf32>
    %28 = vector.shape_cast %27 : vector<8xf32> to vector<8x1xf32>
    %c0_8 = arith.constant 0 : index
    %c0_9 = arith.constant 0 : index
    %29 = vector.load %arg4[%c0_8, %c0_9] : memref<1x1xf32, #tpu.memory_space<vmem>>, vector<1x1xf32>
    %30 = vector.broadcast %29 : vector<1x1xf32> to vector<8x1xf32>
    %31 = arith.addf %28, %30 : vector<8x1xf32>
    %c0_10 = arith.constant 0 : index
    %c0_11 = arith.constant 0 : index
    %32 = vector.load %arg5[%c0_10, %c0_11] : memref<8x1xf32, #tpu.memory_space<vmem>>, vector<8x1xf32>
    tpu.vector_store %arg5[%c0_10, %c0_11], %31 {strides = array<i32>} : memref<8x1xf32, #tpu.memory_space<vmem>>, vector<8x1xf32>,
    return
  }
}

</mosaic_0001>

<bundles_post_ra>
// kernel: tpu_custom_call.1
= control target key start
LH: loop header
LB: loop body
LE: loop exit
PB: predicated region body
PF: predicated region fallthrough
CT: control target
= control target key end

     0   :  { %v81_v0 = vmov 0   ;;  %v82_v2 = vmov 2   ;;  %v83_v3 = vmov 1   ;;  %vm56_vm0 = vcmask 80896   ;;  %s132_s0 = inlined_call_operand.vmem [shape: f32[8,3], index: 0, kind: input, shape index: {}]   ;;  %s133_s2 = inlined_call_operand.vmem [shape: f32[1,10], index: 2, kind: input, shape index: {}]   ;;  %s134_s3 = inlined_call_operand.vmem [shape: f32[1,10], index: 3, kind: input, shape index: {}]   ;;  %s135_s4 = inlined_call_operand.<no memory space> [shape: f32[1,1], index: 4, kind: input, shape index: {}]   ;;  %s136_s1 = inlined_call_operand.vmem [shape: f32[3,10], index: 1, kind: input, shape index: {}]   ;;  %s137_s5 = inlined_call_operand.vmem [shape: f32[8,1], index: 5, kind: output, shape index: {}]  }
   0x1   :  { %74 = vset.pattern.permute.xlu0 %v81_v0  ;;  %v22_v1 = vld [vmem:[%s132_s0] sm:$0xff]  ;;  %76 = vset.pattern.permute.xlu1 %v82_v2  ;;  %v10_v4 = vstv %s135_s4  ;;  %vm65_vm1 = vcmask 7168  }
   0x2   :  { %27 = vperm.xlu0 %74, %v22_v1   ;;  %44 = vperm.xlu1 %76, %v22_v1   ;;  %11 = vst [vmem:[#allocation2] sm:$0x1] %v10_v4  ;;  %v23_v5 = vld [vmem:[%s136_s1] sm:$0x7] }
   0x3   :  { %v30_v7 = vperm.slane %v23_v5, 0  ;;  %v78_v8 = vld [vmem:[%s133_s2] ss:$0 sm:$0xff]  ;;  %v40_v10 = vperm.slane %v23_v5, 1  ;;  %v47_v11 = vperm.slane %v23_v5, 2 }
   0x4   :  { %v79_v19 = vld [vmem:[%s134_s3] ss:$0 sm:$0xff] }
   0x9   :  { %v80_v23 = vld [vmem:[#allocation2] ss:$0 sm:$0xff] }
   0xa   :  { %75 = vset.pattern.permute.xlu0 %v83_v3 }
   0xb   :  { %37 = vperm.xlu0 %75, %v22_v1  }
  0x13   :  { %77 = vset.pattern.permute.xlu0 %v82_v2 }
  0x74   :  { %v28_v6 = vpop.permute.xlu0 %27  ;;  %v45_v12 = vpop.permute.xlu1 %44 }
  0x75   :  { %v31_v9 = vmul.f32 %v30_v7, %v28_v6  ;;  %v48_v16 = vmul.f32 %v47_v11, %v45_v12 }
  0x77   :  { %v35_v14 = vadd.f32 %v78_v8, %v31_v9 }
  0x7d   :  { %v38_v13 = vpop.permute.xlu0 %37 }
  0x7e   :  { %v41_v15 = vmul.f32 %v40_v10, %v38_v13 }
  0x80   :  { %v42_v17 = vadd.f32 %v41_v15, %v35_v14 }
  0x82   :  { %v49_v18 = vadd.f32 %v48_v16, %v42_v17 }
  0x84   :  { %v50_v20 = vmax.f32 %v49_v18, 0.0 }
  0x86   :  { %v55_v21 = vmul.f32 %v79_v19, %v50_v20 }
  0x88   :  { %v57_v22 = vsel %vm56_vm0, %v55_v21, 0.0 }
  0x89   :  { %58 = vadd.xlane.f32.xlu1 %v57_v22 }
  0xfc   :  { %v59_v24 = vpop.xlane.xlu1 %58 }
  0xfd   :  { %v64_v25 = vadd.f32 %v80_v23, %v59_v24 }
  0xff   :  { %66 = vst.msk [vmem:[%s137_s5] sm:$0xff] %vm65_vm1, %v64_v25 }

</bundles_post_ra>
